<compile_context>
chip_gen: v6e
topology: v6e:2x2x1
jax: 0.10.0
libtpu: 0.0.40
codegen_flags: <defaults>
</compile_context>

<pallas_src>
import jax
import jax.numpy as jnp
from jax.experimental import pallas as pl
from jax.experimental.pallas import tpu as pltpu


def _round_up(x, m):
    return ((x + m - 1) // m) * m


def _label_tiling(label_num, label_tile):
    """Pick the largest 128-multiple label tile <= label_tile that divides the
    128-aligned label dim (no extra padding beyond 128-alignment)."""
    l128 = _round_up(label_num, 128)
    tl = min(_round_up(label_tile, 128), l128)
    while tl > 128 and l128 % tl != 0:
        tl -= 128
    l_pad = _round_up(label_num, tl)
    return tl, l_pad


def _vmem_limit(vmem_est):
    """Only request a larger scoped-VMEM limit when we actually need it, and
    cap it below the physical per-core VMEM (v7x has only 64 MiB)."""
    if vmem_est <= (16 << 20):      # fits the smallest default scoped limit
        return None
    try:
        cap = int(pltpu.get_tpu_info().vmem_capacity_bytes) - (8 << 20)
    except Exception:               # conservative fallback, safe on v7x
        cap = 48 << 20
    return int(min(max(vmem_est, 16 << 20), cap))


# --------------------------------------------------------------------------
# Kernels
# --------------------------------------------------------------------------
def _mlp_kernel(x_ref, w0_ref, b0_ref, w1_ref, b1_ref, w2_ref, b2_ref,
                w3_ref, b3_ref, h_ref):
    """4-layer MLP head for one batch tile. Weights are grid-invariant."""
    cdt = h_ref.dtype  # bf16 MXU input dtype; accumulate/bias/ReLU in f32
    h = jnp.dot(x_ref[...], w0_ref[...],
                preferred_element_type=jnp.float32) + b0_ref[...]
    h = jnp.maximum(h, 0.0)
    h = jnp.dot(h.astype(cdt), w1_ref[...],
                preferred_element_type=jnp.float32) + b1_ref[...]
    h = jnp.maximum(h, 0.0)
    h = jnp.dot(h.astype(cdt), w2_ref[...],
                preferred_element_type=jnp.float32) + b2_ref[...]
    h = jnp.maximum(h, 0.0)
    # Layer 3: Linear, NO ReLU (torch applies relu only for i <= 2).
    h = jnp.dot(h.astype(cdt), w3_ref[...],
                preferred_element_type=jnp.float32) + b3_ref[...]
    h_ref[...] = h.astype(cdt)


def _proj_kernel(h_ref, yembt_ref, o_ref):
    """One (label-tile, batch-tile) step of h @ y_emb^T. No cross-step state,
    so both grid axes are safe to mark "parallel" (megacore sharding)."""
    o_ref[...] = jnp.dot(h_ref[...], yembt_ref[...],
                         preferred_element_type=jnp.float32).astype(o_ref.dtype)


# --------------------------------------------------------------------------
# One-time parameter preparation (hoisted out of the jitted forward)
# --------------------------------------------------------------------------
def prepare_params(params, *, compute_dtype=jnp.bfloat16, label_tile=512):
    """Pad / cast / pre-transpose all weights once.

    params (weights stored (in, out), i.e. pre-transposed vs torch):
      w0 (F,H) b0 (H,)   w1 (H,H) b1 (H,)   w2 (H,H) b2 (H,)
      w3 (H,E) b3 (E,)   y_emb (L, E)
    """
    F, H = params["w0"].shape
    E = params["w3"].shape[1]
    L = params["y_emb"].shape[0]
    F_pad, H_pad, E_pad = (_round_up(d, 128) for d in (F, H, E))
    _, L_pad = _label_tiling(L, label_tile)

    cdt = compute_dtype
    f32 = jnp.float32

    def pad2(a, rows, cols, dtype):
        a = a.astype(dtype)
        return jnp.pad(a, ((0, rows - a.shape[0]), (0, cols - a.shape[1])))

    return {
        "w0": pad2(params["w0"], F_pad, H_pad, cdt),
        "b0": pad2(params["b0"].reshape(1, -1), 1, H_pad, f32),
        "w1": pad2(params["w1"], H_pad, H_pad, cdt),
        "b1": pad2(params["b1"].reshape(1, -1), 1, H_pad, f32),
        "w2": pad2(params["w2"], H_pad, H_pad, cdt),
        "b2": pad2(params["b2"].reshape(1, -1), 1, H_pad, f32),
        "w3": pad2(params["w3"], H_pad, E_pad, cdt),
        "b3": pad2(params["b3"].reshape(1, -1), 1, E_pad, f32),
        # Pre-transposed so the kernel computes h @ y_emb^T with the label axis
        # lane-dense (full-width vst output stores, no in-kernel transpose).
        "yembt": pad2(params["y_emb"].T, E_pad, L_pad, cdt),
    }


# --------------------------------------------------------------------------
# Forward
# --------------------------------------------------------------------------
def popdx_forward(x, prep, *, label_num, label_tile=512, batch_tile=None,
                  out_dtype=jnp.float32):
    """POPDxModelC forward. `prep` comes from prepare_params(). Returns
    logits of shape (B, label_num)."""
    B, F = x.shape
    cdt = prep["w0"].dtype
    F_pad, H_pad = prep["w0"].shape
    E_pad = prep["w3"].shape[1]
    L_pad = prep["yembt"].shape[1]
    tl, L_pad_chk = _label_tiling(label_num, label_tile)
    assert L_pad_chk == L_pad, "label_tile mismatch between prepare_params and forward"

    # ---- batch tiling ------------------------------------------------------
    if batch_tile is None:
        if B >= 512:
            batch_tile = 256          # fills the 2x256^2 MXU on v6e/v7x
        elif B >= 256:
            batch_tile = 128
        else:
            batch_tile = _round_up(B, 16)   # single tile for small batches
    tm = _round_up(batch_tile, 16)
    B_pad = _round_up(B, tm)
    nb = B_pad // tm
    nl = L_pad // tl

    bpe = jnp.dtype(cdt).itemsize
    out_bpe = jnp.dtype(out_dtype).itemsize

    # Zero-padding is exact: padded rows/cols contribute nothing.
    x_p = jnp.pad(x.astype(cdt), ((0, B_pad - B), (0, F_pad - F)))

    # ---- stage 1: MLP head -> h (B_pad, E_pad) bf16 --------------------------
    # Grid-invariant weights are single-buffered: they never change block
    # index, so a second buffer only wastes VMEM (critical on v7x, 64 MiB).
    winv = lambda shape: pl.BlockSpec(shape, lambda i: (0, 0),
                                      pipeline_mode=pl.Buffered(1))

    mlp_flops = 2 * B_pad * (F_pad * H_pad + 2 * H_pad * H_pad + H_pad * E_pad)
    mlp_bytes = int(x_p.size * bpe
                    + sum(prep[k].size * prep[k].dtype.itemsize
                          for k in ("w0", "b0", "w1", "b1", "w2", "b2", "w3", "b3"))
                    + B_pad * E_pad * bpe)
    mlp_vmem = (2 * tm * F_pad * bpe                                  # x (double-buffered)
                + (F_pad * H_pad + 2 * H_pad * H_pad + H_pad * E_pad) * bpe  # weights (single)
                + (3 * H_pad + E_pad) * 4                             # biases (f32)
                + 2 * tm * E_pad * bpe                                # h out (double-buffered)
                + (2 << 20))

    h = pl.pallas_call(
        _mlp_kernel,
        out_shape=jax.ShapeDtypeStruct((B_pad, E_pad), cdt),
        grid_spec=pltpu.PrefetchScalarGridSpec(
            num_scalar_prefetch=0,
            grid=(nb,),
            in_specs=[
                pl.BlockSpec((tm, F_pad), lambda i: (i, 0)),   # x tile
                winv((F_pad, H_pad)), winv((1, H_pad)),        # w0, b0
                winv((H_pad, H_pad)), winv((1, H_pad)),        # w1, b1
                winv((H_pad, H_pad)), winv((1, H_pad)),        # w2, b2
                winv((H_pad, E_pad)), winv((1, E_pad)),        # w3, b3
            ],
            out_specs=pl.BlockSpec((tm, E_pad), lambda i: (i, 0)),
        ),
        compiler_params=pltpu.CompilerParams(
            dimension_semantics=("parallel",),
            vmem_limit_bytes=_vmem_limit(mlp_vmem)),
        cost_estimate=pl.CostEstimate(flops=int(mlp_flops), transcendentals=0,
                                      bytes_accessed=mlp_bytes),
    )(x_p, prep["w0"], prep["b0"], prep["w1"], prep["b1"],
      prep["w2"], prep["b2"], prep["w3"], prep["b3"])

    # ---- stage 2: projection h @ y_emb^T ------------------------------------
    # Label axis is the OUTER grid dim: the y_emb^T block index is constant
    # across the inner batch loop, so each y_emb^T tile (the dominant HBM
    # operand) is DMA'd exactly once; only the tiny h tile is re-streamed.
    proj_flops = 2 * B_pad * E_pad * L_pad
    proj_bytes = int(B_pad * E_pad * bpe * nl      # h re-read once per label tile
                     + E_pad * L_pad * bpe         # y_emb^T read exactly once
                     + B_pad * L_pad * out_bpe)
    proj_vmem = (2 * tm * E_pad * bpe + 2 * E_pad * tl * bpe
                 + 2 * tm * tl * out_bpe + (2 << 20))

    out = pl.pallas_call(
        _proj_kernel,
        out_shape=jax.ShapeDtypeStruct((B_pad, L_pad), out_dtype),
        grid_spec=pltpu.PrefetchScalarGridSpec(
            num_scalar_prefetch=0,
            grid=(nl, nb),
            in_specs=[
                pl.BlockSpec((tm, E_pad), lambda l, b: (b, 0)),   # h tile
                pl.BlockSpec((E_pad, tl), lambda l, b: (0, l)),   # y_emb^T tile
            ],
            out_specs=pl.BlockSpec((tm, tl), lambda l, b: (b, l)),
        ),
        compiler_params=pltpu.CompilerParams(
            dimension_semantics=("parallel", "parallel"),
            vmem_limit_bytes=_vmem_limit(proj_vmem)),
        cost_estimate=pl.CostEstimate(flops=int(proj_flops), transcendentals=0,
                                      bytes_accessed=proj_bytes),
    )(h, prep["yembt"])

    return out[:B, :label_num]


# --------------------------------------------------------------------------
# Parameter init + plain-JAX reference
# --------------------------------------------------------------------------
def init_params(key, feature_num, label_num, hidden_size, emb_dim,
                dtype=jnp.float32):
    """Kaiming-normal weights (like module.initialize()), torch-default biases."""
    ks = jax.random.split(key, 9)

    def kaiming(k, fan_in, shape):
        return jax.random.normal(k, shape, dtype) * jnp.sqrt(2.0 / fan_in).astype(dtype)

    def bias(k, fan_in, shape):
        bound = 1.0 / float(fan_in) ** 0.5
        return jax.random.uniform(k, shape, dtype, -bound, bound)

    return {
        # weights stored (in, out): x @ W + b  ==  torch's  x @ W.T + b
        "w0": kaiming(ks[0], feature_num, (feature_num, hidden_size)),
        "b0": bias(ks[1], feature_num, (hidden_size,)),
        "w1": kaiming(ks[2], hidden_size, (hidden_size, hidden_size)),
        "b1": bias(ks[3], hidden_size, (hidden_size,)),
        "w2": kaiming(ks[4], hidden_size, (hidden_size, hidden_size)),
        "b2": bias(ks[5], hidden_size, (hidden_size,)),
        "w3": kaiming(ks[6], hidden_size, (hidden_size, emb_dim)),
        "b3": bias(ks[7], hidden_size, (emb_dim,)),
        "y_emb": jax.random.normal(ks[8], (label_num, emb_dim), dtype),
    }


def popdx_reference(x, params, compute_dtype=jnp.bfloat16):
    """Plain-JAX reference using the same bf16-operand / f32-accumulate path."""
    q = lambda a: a.astype(compute_dtype)
    h = jnp.dot(q(x), q(params["w0"]), preferred_element_type=jnp.float32) + params["b0"]
    h = jnp.maximum(h, 0.0)
    h = jnp.dot(q(h), q(params["w1"]), preferred_element_type=jnp.float32) + params["b1"]
    h = jnp.maximum(h, 0.0)
    h = jnp.dot(q(h), q(params["w2"]), preferred_element_type=jnp.float32) + params["b2"]
    h = jnp.maximum(h, 0.0)
    h = jnp.dot(q(h), q(params["w3"]), preferred_element_type=jnp.float32) + params["b3"]
    return jnp.dot(q(h), q(params["y_emb"]).T, preferred_element_type=jnp.float32)


if __name__ == "__main__":
    # Small shapes consistent with the module's constructor args.
    batch, feature_num, hidden_size, emb_dim, label_num = 32, 48, 32, 24, 200

    key = jax.random.PRNGKey(0)
    k_x, k_p = jax.random.split(key)
    x = jax.random.normal(k_x, (batch, feature_num), dtype=jnp.float32)
    params = init_params(k_p, feature_num, label_num, hidden_size, emb_dim)

    # One-time padding / casting / pre-transpose of all weights.
    prep = prepare_params(params)

    fwd = jax.jit(lambda xx, pp: popdx_forward(xx, pp, label_num=label_num))
    out = jax.block_until_ready(fwd(x, prep))

    ref = popdx_reference(x, params)
    assert out.shape == (batch, label_num), out.shape
    assert jnp.allclose(out, ref, atol=1e-2, rtol=1e-2), float(
        jnp.max(jnp.abs(out - ref)))

    print("KERNEL_OK")
</pallas_src>

<mosaic_0001>
module attributes {stable_mosaic.version = 11 : i64} {
  func.func @_proj_kernel(%arg0: i32, %arg1: i32, %arg2: memref<32x128xbf16, #tpu.memory_space<vmem>>, %arg3: memref<128x256xbf16, #tpu.memory_space<vmem>>, %arg4: memref<32x256xf32, #tpu.memory_space<vmem>>) attributes {dimension_semantics = [#tpu.dimension_semantics<parallel>, #tpu.dimension_semantics<parallel>], iteration_bounds = array<i64: 1, 1>, scalar_prefetch = 0 : i64, scratch_operands = 0 : i64, tpu.core_type = #tpu.core_type<tc>, window_params = [{transform_indices = @transform_0, window_bounds = array<i64: 32, 128>}, {transform_indices = @transform_1, window_bounds = array<i64: 128, 256>}, {transform_indices = @transform_2, window_bounds = array<i64: 32, 256>}]} {
    %c0 = arith.constant 0 : index
    %c0_0 = arith.constant 0 : index
    %0 = vector.load %arg2[%c0, %c0_0] : memref<32x128xbf16, #tpu.memory_space<vmem>>, vector<32x128xbf16>
    %c0_1 = arith.constant 0 : index
    %c0_2 = arith.constant 0 : index
    %1 = vector.load %arg3[%c0_1, %c0_2] : memref<128x256xbf16, #tpu.memory_space<vmem>>, vector<128x256xbf16>
    %cst = arith.constant dense<0.000000e+00> : vector<32x256xf32>
    %2 = tpu.matmul %0, %1, %cst {dimension_numbers = #tpu.dot_dimension_numbers<[1], [0], [0], [1], [0, 0, 1, 1], [], []>} : vector<32x128xbf16>, vector<128x256xbf16>, vector<32x256xf32> -> vector<32x256xf32>
    %c0_3 = arith.constant 0 : index
    %c0_4 = arith.constant 0 : index
    %3 = vector.load %arg4[%c0_3, %c0_4] : memref<32x256xf32, #tpu.memory_space<vmem>>, vector<32x256xf32>
    tpu.vector_store %arg4[%c0_3, %c0_4], %2 {strides = array<i32>} : memref<32x256xf32, #tpu.memory_space<vmem>>, vector<32x256xf32>,
    return
  }
  func.func @transform_0(%arg0: i32, %arg1: i32) -> (i32, i32) {
    %c0_i32 = arith.constant 0 : i32
    %c0_i32_0 = arith.constant 0 : i32
    return %arg1, %c0_i32 : i32, i32
  }
  func.func @transform_1(%arg0: i32, %arg1: i32) -> (i32, i32) {
    %c0_i32 = arith.constant 0 : i32
    %c0_i32_0 = arith.constant 0 : i32
    return %c0_i32, %arg0 : i32, i32
  }
  func.func @transform_2(%arg0: i32, %arg1: i32) -> (i32, i32) {
    %c0_i32 = arith.constant 0 : i32
    return %arg1, %arg0 : i32, i32
  }
}

module attributes {stable_mosaic.version = 11 : i64} {
  func.func @_mlp_kernel(%arg0: i32, %arg1: memref<32x128xbf16, #tpu.memory_space<vmem>>, %arg2: memref<128x128xbf16, #tpu.memory_space<vmem>>, %arg3: memref<1x128xf32, #tpu.memory_space<vmem>>, %arg4: memref<128x128xbf16, #tpu.memory_space<vmem>>, %arg5: memref<1x128xf32, #tpu.memory_space<vmem>>, %arg6: memref<128x128xbf16, #tpu.memory_space<vmem>>, %arg7: memref<1x128xf32, #tpu.memory_space<vmem>>, %arg8: memref<128x128xbf16, #tpu.memory_space<vmem>>, %arg9: memref<1x128xf32, #tpu.memory_space<vmem>>, %arg10: memref<32x128xbf16, #tpu.memory_space<vmem>>) attributes {dimension_semantics = [#tpu.dimension_semantics<parallel>], iteration_bounds = array<i64: 1>, scalar_prefetch = 0 : i64, scratch_operands = 0 : i64, tpu.core_type = #tpu.core_type<tc>, window_params = [{transform_indices = @transform_0, window_bounds = array<i64: 32, 128>}, {pipeline_mode = #tpu.pipeline_mode<synchronous>, transform_indices = @transform_1, window_bounds = array<i64: 128, 128>}, {pipeline_mode = #tpu.pipeline_mode<synchronous>, transform_indices = @transform_2, window_bounds = array<i64: 1, 128>}, {pipeline_mode = #tpu.pipeline_mode<synchronous>, transform_indices = @transform_3, window_bounds = array<i64: 128, 128>}, {pipeline_mode = #tpu.pipeline_mode<synchronous>, transform_indices = @transform_4, window_bounds = array<i64: 1, 128>}, {pipeline_mode = #tpu.pipeline_mode<synchronous>, transform_indices = @transform_5, window_bounds = array<i64: 128, 128>}, {pipeline_mode = #tpu.pipeline_mode<synchronous>, transform_indices = @transform_6, window_bounds = array<i64: 1, 128>}, {pipeline_mode = #tpu.pipeline_mode<synchronous>, transform_indices = @transform_7, window_bounds = array<i64: 128, 128>}, {pipeline_mode = #tpu.pipeline_mode<synchronous>, transform_indices = @transform_8, window_bounds = array<i64: 1, 128>}, {transform_indices = @transform_9, window_bounds = array<i64: 32, 128>}]} {
    %c0 = arith.constant 0 : index
    %c0_0 = arith.constant 0 : index
    %0 = vector.load %arg1[%c0, %c0_0] : memref<32x128xbf16, #tpu.memory_space<vmem>>, vector<32x128xbf16>
    %c0_1 = arith.constant 0 : index
    %c0_2 = arith.constant 0 : index
    %1 = vector.load %arg2[%c0_1, %c0_2] : memref<128x128xbf16, #tpu.memory_space<vmem>>, vector<128x128xbf16>
    %cst = arith.constant dense<0.000000e+00> : vector<32x128xf32>
    %2 = tpu.matmul %0, %1, %cst {dimension_numbers = #tpu.dot_dimension_numbers<[1], [0], [0], [1], [0, 0, 1, 1], [], []>} : vector<32x128xbf16>, vector<128x128xbf16>, vector<32x128xf32> -> vector<32x128xf32>
    %c0_3 = arith.constant 0 : index
    %c0_4 = arith.constant 0 : index
    %3 = vector.load %arg3[%c0_3, %c0_4] : memref<1x128xf32, #tpu.memory_space<vmem>>, vector<1x128xf32>
    %4 = vector.broadcast %3 : vector<1x128xf32> to vector<32x128xf32>
    %5 = arith.addf %2, %4 : vector<32x128xf32>
    %cst_5 = arith.constant 0.000000e+00 : f32
    %6 = vector.broadcast %cst_5 : f32 to vector<32x128xf32>
    %7 = arith.maximumf %5, %6 : vector<32x128xf32>
    %8 = arith.truncf %7 : vector<32x128xf32> to vector<32x128xbf16>
    %c0_6 = arith.constant 0 : index
    %c0_7 = arith.constant 0 : index
    %9 = vector.load %arg4[%c0_6, %c0_7] : memref<128x128xbf16, #tpu.memory_space<vmem>>, vector<128x128xbf16>
    %cst_8 = arith.constant dense<0.000000e+00> : vector<32x128xf32>
    %10 = tpu.matmul %8, %9, %cst_8 {dimension_numbers = #tpu.dot_dimension_numbers<[1], [0], [0], [1], [0, 0, 1, 1], [], []>} : vector<32x128xbf16>, vector<128x128xbf16>, vector<32x128xf32> -> vector<32x128xf32>
    %c0_9 = arith.constant 0 : index
    %c0_10 = arith.constant 0 : index
    %11 = vector.load %arg5[%c0_9, %c0_10] : memref<1x128xf32, #tpu.memory_space<vmem>>, vector<1x128xf32>
    %12 = vector.broadcast %11 : vector<1x128xf32> to vector<32x128xf32>
    %13 = arith.addf %10, %12 : vector<32x128xf32>
    %cst_11 = arith.constant 0.000000e+00 : f32
    %14 = vector.broadcast %cst_11 : f32 to vector<32x128xf32>
    %15 = arith.maximumf %13, %14 : vector<32x128xf32>
    %16 = arith.truncf %15 : vector<32x128xf32> to vector<32x128xbf16>
    %c0_12 = arith.constant 0 : index
    %c0_13 = arith.constant 0 : index
    %17 = vector.load %arg6[%c0_12, %c0_13] : memref<128x128xbf16, #tpu.memory_space<vmem>>, vector<128x128xbf16>
    %cst_14 = arith.constant dense<0.000000e+00> : vector<32x128xf32>
    %18 = tpu.matmul %16, %17, %cst_14 {dimension_numbers = #tpu.dot_dimension_numbers<[1], [0], [0], [1], [0, 0, 1, 1], [], []>} : vector<32x128xbf16>, vector<128x128xbf16>, vector<32x128xf32> -> vector<32x128xf32>
    %c0_15 = arith.constant 0 : index
    %c0_16 = arith.constant 0 : index
    %19 = vector.load %arg7[%c0_15, %c0_16] : memref<1x128xf32, #tpu.memory_space<vmem>>, vector<1x128xf32>
    %20 = vector.broadcast %19 : vector<1x128xf32> to vector<32x128xf32>
    %21 = arith.addf %18, %20 : vector<32x128xf32>
    %cst_17 = arith.constant 0.000000e+00 : f32
    %22 = vector.broadcast %cst_17 : f32 to vector<32x128xf32>
    %23 = arith.maximumf %21, %22 : vector<32x128xf32>
    %24 = arith.truncf %23 : vector<32x128xf32> to vector<32x128xbf16>
    %c0_18 = arith.constant 0 : index
    %c0_19 = arith.constant 0 : index
    %25 = vector.load %arg8[%c0_18, %c0_19] : memref<128x128xbf16, #tpu.memory_space<vmem>>, vector<128x128xbf16>
    %cst_20 = arith.constant dense<0.000000e+00> : vector<32x128xf32>
    %26 = tpu.matmul %24, %25, %cst_20 {dimension_numbers = #tpu.dot_dimension_numbers<[1], [0], [0], [1], [0, 0, 1, 1], [], []>} : vector<32x128xbf16>, vector<128x128xbf16>, vector<32x128xf32> -> vector<32x128xf32>
    %c0_21 = arith.constant 0 : index
    %c0_22 = arith.constant 0 : index
    %27 = vector.load %arg9[%c0_21, %c0_22] : memref<1x128xf32, #tpu.memory_space<vmem>>, vector<1x128xf32>
    %28 = vector.broadcast %27 : vector<1x128xf32> to vector<32x128xf32>
    %29 = arith.addf %26, %28 : vector<32x128xf32>
    %30 = arith.truncf %29 : vector<32x128xf32> to vector<32x128xbf16>
    %c0_23 = arith.constant 0 : index
    %c0_24 = arith.constant 0 : index
    %31 = vector.load %arg10[%c0_23, %c0_24] : memref<32x128xbf16, #tpu.memory_space<vmem>>, vector<32x128xbf16>
    tpu.vector_store %arg10[%c0_23, %c0_24], %30 {strides = array<i32>} : memref<32x128xbf16, #tpu.memory_space<vmem>>, vector<32x128xbf16>,
    return
  }
  func.func @transform_0(%arg0: i32) -> (i32, i32) {
    %c0_i32 = arith.constant 0 : i32
    %c0_i32_0 = arith.constant 0 : i32
    return %arg0, %c0_i32 : i32, i32
  }
  func.func @transform_1(%arg0: i32) -> (i32, i32) {
    %c0_i32 = arith.constant 0 : i32
    %c0_i32_0 = arith.constant 0 : i32
    %c0_i32_1 = arith.constant 0 : i32
    return %c0_i32, %c0_i32_0 : i32, i32
  }
  func.func @transform_2(%arg0: i32) -> (i32, i32) {
    %c0_i32 = arith.constant 0 : i32
    %c0_i32_0 = arith.constant 0 : i32
    %c0_i32_1 = arith.constant 0 : i32
    return %c0_i32, %c0_i32_0 : i32, i32
  }
  func.func @transform_3(%arg0: i32) -> (i32, i32) {
    %c0_i32 = arith.constant 0 : i32
    %c0_i32_0 = arith.constant 0 : i32
    %c0_i32_1 = arith.constant 0 : i32
    return %c0_i32, %c0_i32_0 : i32, i32
  }
  func.func @transform_4(%arg0: i32) -> (i32, i32) {
    %c0_i32 = arith.constant 0 : i32
    %c0_i32_0 = arith.constant 0 : i32
    %c0_i32_1 = arith.constant 0 : i32
    return %c0_i32, %c0_i32_0 : i32, i32
  }
  func.func @transform_5(%arg0: i32) -> (i32, i32) {
    %c0_i32 = arith.constant 0 : i32
    %c0_i32_0 = arith.constant 0 : i32
    %c0_i32_1 = arith.constant 0 : i32
    return %c0_i32, %c0_i32_0 : i32, i32
  }
  func.func @transform_6(%arg0: i32) -> (i32, i32) {
    %c0_i32 = arith.constant 0 : i32
    %c0_i32_0 = arith.constant 0 : i32
    %c0_i32_1 = arith.constant 0 : i32
    return %c0_i32, %c0_i32_0 : i32, i32
  }
  func.func @transform_7(%arg0: i32) -> (i32, i32) {
    %c0_i32 = arith.constant 0 : i32
    %c0_i32_0 = arith.constant 0 : i32
    %c0_i32_1 = arith.constant 0 : i32
    return %c0_i32, %c0_i32_0 : i32, i32
  }
  func.func @transform_8(%arg0: i32) -> (i32, i32) {
    %c0_i32 = arith.constant 0 : i32
    %c0_i32_0 = arith.constant 0 : i32
    %c0_i32_1 = arith.constant 0 : i32
    return %c0_i32, %c0_i32_0 : i32, i32
  }
  func.func @transform_9(%arg0: i32) -> (i32, i32) {
    %c0_i32 = arith.constant 0 : i32
    %c0_i32_0 = arith.constant 0 : i32
    return %arg0, %c0_i32 : i32, i32
  }
}

</mosaic_0001>

<bundles_post_ra>
// kernel: _lambda_.3
= control target key start
LH: loop header
LB: loop body
LE: loop exit
PB: predicated region body
PF: predicated region fallthrough
CT: control target
= control target key end

     0   :  { %v288_v2 = vmov 0   ;;  %s364_s0 = inlined_call_operand.vmem [shape: bf16[32,128], index: 0, kind: input, shape index: {}]   ;;  %s365_s1 = inlined_call_operand.vmem [shape: bf16[128,256], index: 1, kind: input, shape index: {}]   ;;  %s366_s2 = inlined_call_operand.hbm [shape: f32[32,256], index: 2, kind: output, shape index: {}]  }
   0x1   :  { %v240_v0 = vld [vmem:[%s365_s1 + $0x74] ss:$8 sps:$4 sm:$0xff]   ;;  %v242_v1 = vld [vmem:[%s365_s1 + $0x70] ss:$8 sps:$4 sm:$0xff]   ;;  %157 = vmatprep.mubr.bf16.mxu0 %v288_v2  ;;  %167 = vmatprep.mubr.bf16.mxu1 %v288_v2  ;;  %v243_v3 = vld [vmem:[%s365_s1 + $0x64] ss:$8 sps:$4 sm:$0xff]  }
   0x2   :  { %125 = vmatprep.subr.bf16.mxu0 %v240_v0  ;;  %220 = vmatprep.subr.bf16.mxu1 %v240_v0  ;;  %v245_v4 = vld [vmem:[%s365_s1 + $0x60] ss:$8 sps:$4 sm:$0xff]   ;;  %v246_v5 = vld [vmem:[%s365_s1 + $0x54] ss:$8 sps:$4 sm:$0xff]   ;;  %v248_v6 = vld [vmem:[%s365_s1 + $0x50] ss:$8 sps:$4 sm:$0xff]  }
   0x3   :  { %126 = vmatpush1.bf16.msra.mxu0 %v242_v1  ;;  %228 = vmatpush1.bf16.msra.mxu1 %v242_v1  ;;  %v249_v7 = vld [vmem:[%s365_s1 + $0x44] ss:$8 sps:$4 sm:$0xff]   ;;  %v251_v8 = vld [vmem:[%s365_s1 + $0x40] ss:$8 sps:$4 sm:$0xff]   ;;  %v252_v9 = vld [vmem:[%s365_s1 + $0x34] ss:$8 sps:$4 sm:$0xff]  }
   0x4   :  { %127 = vmatprep.subr.bf16.mxu0 %v243_v3  ;;  %221 = vmatprep.subr.bf16.mxu1 %v243_v3 }
   0x7   :  { %128 = vmatpush1.bf16.msra.mxu0 %v245_v4  ;;  %229 = vmatpush1.bf16.msra.mxu1 %v245_v4 }
   0x8   :  { %129 = vmatprep.subr.bf16.mxu0 %v246_v5  ;;  %222 = vmatprep.subr.bf16.mxu1 %v246_v5 }
   0xb   :  { %130 = vmatpush1.bf16.msra.mxu0 %v248_v6  ;;  %230 = vmatpush1.bf16.msra.mxu1 %v248_v6 }
   0xc   :  { %131 = vmatprep.subr.bf16.mxu0 %v249_v7  ;;  %223 = vmatprep.subr.bf16.mxu1 %v249_v7 }
   0xd   :  { %7 = vsyncpa [#allocation3], 0  ;;  %v254_v10 = vld [vmem:[%s365_s1 + $0x30] ss:$8 sps:$4 sm:$0xff]   ;;  %v255_v11 = vld [vmem:[%s365_s1 + $0x24] ss:$8 sps:$4 sm:$0xff]  }
   0xe   :  { %v257_v12 = vld [vmem:[%s365_s1 + $0x20] ss:$8 sps:$4 sm:$0xff]   ;;  %v258_v13 = vld [vmem:[%s365_s1 + $0x14] ss:$8 sps:$4 sm:$0xff]   ;;  %v260_v14 = vld [vmem:[%s365_s1 + $0x10] ss:$8 sps:$4 sm:$0xff]  }
   0xf   :  { %132 = vmatpush1.bf16.msra.mxu0 %v251_v8  ;;  %231 = vmatpush1.bf16.msra.mxu1 %v251_v8  ;;  %v261_v15 = vld [vmem:[%s365_s1 + $0x4] ss:$8 sps:$4 sm:$0xff]   ;;  %v263_v16 = vld [vmem:[%s365_s1] ss:$8 sps:$4 sm:$0xff]   ;;  %s289_s17 = smov [#allocation2]  }
  0x10   :  { %133 = vmatprep.subr.bf16.mxu0 %v252_v9  ;;  %224 = vmatprep.subr.bf16.mxu1 %v252_v9  ;;  %v264_v17 = vld [vmem:[%s364_s0] sm:$0xff]   ;;  %v265_v18 = vld [vmem:[%s364_s0 + $0x8] sm:$0xff]   ;;  %s191_s1 = sshll.u32 %s289_s17, 4  ;;  %s192_s1 = int_to_ptr.vmem [resolvable:$true] %s191_s1 }
  0x11   :  { %s266_s0 = scalar_lea.vmem %s192_s1, 1024  ;;  %p271_p1 = scmp.lt.s32.totalorder %s192_s1, %s192_s1 }
  0x12   :  { %p267_p0 = scmp.ne.s32.totalorder %s192_s1, %s266_s0  ;;  %p272_p2 = scmp.lt.s32.totalorder %s266_s0, %s266_s0 }
  0x13   :  { %134 = vmatpush1.bf16.msra.mxu0 %v254_v10  ;;  %232 = vmatpush1.bf16.msra.mxu1 %v254_v10 }
  0x14   :  { %135 = vmatprep.subr.bf16.mxu0 %v255_v11  ;;  %225 = vmatprep.subr.bf16.mxu1 %v255_v11  ;;  %p273_p3 = por %p272_p2, %p271_p1 }
  0x16   :  { %p274_p4 = pnand %p273_p3, %p267_p0 }
  0x17   :  { %136 = vmatpush1.bf16.msra.mxu0 %v257_v12  ;;  %233 = vmatpush1.bf16.msra.mxu1 %v257_v12 }
  0x18   :  { %137 = vmatprep.subr.bf16.mxu0 %v258_v13  ;;  %226 = vmatprep.subr.bf16.mxu1 %v258_v13 }
  0x1b   :  { %138 = vmatpush1.bf16.msra.mxu0 %v260_v14  ;;  %234 = vmatpush1.bf16.msra.mxu1 %v260_v14 }
  0x1c   :  { %139 = vmatprep.subr.bf16.mxu0 %v261_v15  ;;  %227 = vmatprep.subr.bf16.mxu1 %v261_v15 }
  0x1f   :  { %140 = vmatpush1.bf16.msra.mxu0 %v263_v16  ;;  %235 = vmatpush1.bf16.msra.mxu1 %v263_v16 }
  0x22   :  { %158 = vmatmul.mubr.bf16.vlgmr.msra.gmra.mxu0 %v264_v17  ;;  %168 = vmatmul.mubr.bf16.vlgmr.msra.gmra.mxu1 %v265_v18 }
  0xe2   :  { %v159_v19 = vpop.f32.mrf.mxu0  ;;  %v169_v20 = vpop.f32.mrf.mxu1 }
  0xe3   :  { %178 = vst [vmem:[#allocation2] sm:$0xff] %v159_v19  ;;  %182 = vst [vmem:[#allocation2 + $0x20] sm:$0xff] %v169_v20 }
  0xe4   :  { %v161_v21 = vpop.f32.mrf.mxu0  ;;  %v171_v22 = vpop.f32.mrf.mxu1 }
  0xe5   :  { %179 = vst [vmem:[#allocation2 + $0x8] sm:$0xff] %v161_v21  ;;  %183 = vst [vmem:[#allocation2 + $0x28] sm:$0xff] %v171_v22 }
  0xe6   :  { %v163_v23 = vpop.f32.mrf.mxu0  ;;  %v173_v24 = vpop.f32.mrf.mxu1 }
  0xe7   :  { %180 = vst [vmem:[#allocation2 + $0x10] sm:$0xff] %v163_v23  ;;  %184 = vst [vmem:[#allocation2 + $0x30] sm:$0xff] %v173_v24 }
  0xe8   :  { %v165_v25 = vpop.f32.mrf.mxu0  ;;  %v175_v26 = vpop.f32.mrf.mxu1 }
  0xe9   :  { %181 = vst [vmem:[#allocation2 + $0x18] sm:$0xff] %v165_v25  ;;  %185 = vst [vmem:[#allocation2 + $0x38] sm:$0xff] %v175_v26 }
  0xea   :  { %277 = shalt.err (!%p274_p4)
}
  0xeb   :  { %s290_s18 = smov 256   ;;  %s291_s19 = smov 16  }
  0xec   :  { %197 = dma.vmem_to_hbm [thread:$0]  %s192_s1, 1024, %s366_s2, [#allocation3], %s290_s18, %s290_s18, %s291_s19  }
  0xed   :  { %286 = dma.done.wait [#allocation3], 1024  }
  0xee   :  { %287 = vsyncadd [#allocation3], 4294966272 }
  0xef   :  { %201 = vsyncpa [#allocation3], 1 }

// kernel: _lambda_.2
= control target key start
LH: loop header
LB: loop body
LE: loop exit
PB: predicated region body
PF: predicated region fallthrough
CT: control target
= control target key end

     0   :  { %14 = vsyncpa [#allocation3], 0  ;;  %s1006_s0 = inlined_call_operand.vmem [shape: bf16[32,128], index: 0, kind: input, shape index: {}]   ;;  %s1007_s1 = inlined_call_operand.vmem [shape: bf16[128,128], index: 1, kind: input, shape index: {}]   ;;  %s1008_s2 = inlined_call_operand.vmem [shape: f32[1,128], index: 2, kind: input, shape index: {}]   ;;  %s1009_s3 = inlined_call_operand.hbm [shape: bf16[128,128], index: 3, kind: input, shape index: {}]   ;;  %s1010_s4 = inlined_call_operand.vmem [shape: f32[1,128], index: 4, kind: input, shape index: {}]   ;;  %s1011_s5 = inlined_call_operand.hbm [shape: bf16[128,128], index: 5, kind: input, shape index: {}]   ;;  %s1012_s6 = inlined_call_operand.vmem [shape: f32[1,128], index: 6, kind: input, shape index: {}]   ;;  %s1013_s7 = inlined_call_operand.hbm [shape: bf16[128,128], index: 7, kind: input, shape index: {}]   ;;  %s1014_s8 = inlined_call_operand.vmem [shape: f32[1,128], index: 8, kind: input, shape index: {}]   ;;  %s1015_s9 = inlined_call_operand.vmem [shape: bf16[32,128], index: 9, kind: output, shape index: {}]  }
   0x1   :  { %15 = vsyncpa [#allocation5], 0  ;;  %s894_s30 = smov [#allocation4]   ;;  %s895_s11 = smov [#allocation2]  }
   0x2   :  { %s41_s10 = sshll.u32 %s894_s30, 4  ;;  %s27_s12 = sshll.u32 %s895_s11, 4  ;;  %s42_s10 = int_to_ptr.vmem [resolvable:$true] %s41_s10  ;;  %s28_s12 = int_to_ptr.vmem [resolvable:$true] %s27_s12 }
   0x3   :  { %s838_s13 = scalar_lea.vmem %s42_s10, 1024  ;;  %p843_p1 = scmp.lt.s32.totalorder %s42_s10, %s42_s10 }
   0x4   :  { %p839_p0 = scmp.ne.s32.totalorder %s42_s10, %s838_s13  ;;  %p844_p2 = scmp.lt.s32.totalorder %s838_s13, %s838_s13 }
   0x6   :  { %p845_p3 = por %p844_p2, %p843_p1 }
   0x8   :  { %p846_p4 = pnand %p845_p3, %p839_p0 }
   0xa   :  { %849 = shalt.err (!%p846_p4)
}
   0xb   :  { %s896_s14 = smov 64   ;;  %s897_s15 = smov 4  }
   0xc   :  { %47 = dma.hbm_to_vmem [thread:$0]  %s1011_s5, 1024, %s42_s10, [#allocation5], %s896_s14, %s896_s14, %s897_s15  }
   0xd   :  { %s858_s18 = scalar_lea.vmem %s28_s12, 1024  ;;  %p863_p6 = scmp.lt.s32.totalorder %s28_s12, %s28_s12 }
   0xe   :  { %p859_p5 = scmp.ne.s32.totalorder %s28_s12, %s858_s18  ;;  %p864_p7 = scmp.lt.s32.totalorder %s858_s18, %s858_s18 }
  0x10   :  { %p865_p8 = por %p864_p7, %p863_p6 }
  0x12   :  { %p866_p9 = pnand %p865_p8, %p859_p5 }
  0x14   :  { %869 = shalt.err (!%p866_p9)
}
  0x15   :  { %33 = dma.hbm_to_vmem [thread:$0]  %s1009_s3, 1024, %s28_s12, [#allocation3], %s896_s14, %s896_s14, %s897_s15  }
  0x16   :  { %s898_s21 = smov [#allocation6]  }
  0x17   :  { %s55_s22 = sshll.u32 %s898_s21, 4  ;;  %s56_s22 = int_to_ptr.vmem [resolvable:$true] %s55_s22 }
  0x18   :  { %s878_s23 = scalar_lea.vmem %s56_s22, 1024  ;;  %p883_p11 = scmp.lt.s32.totalorder %s56_s22, %s56_s22 }
  0x19   :  { %p879_p10 = scmp.ne.s32.totalorder %s56_s22, %s878_s23  ;;  %p884_p12 = scmp.lt.s32.totalorder %s878_s23, %s878_s23 }
  0x1b   :  { %p885_p13 = por %p884_p12, %p883_p11 }
  0x1d   :  { %p886_p0 = pnand %p885_p13, %p879_p10 }
  0x1f   :  { %889 = shalt.err (!%p886_p0)
}
  0x20   :  { %61 = dma.hbm_to_vmem [thread:$0]  %s1013_s7, 1024, %s56_s22, [#allocation5], %s896_s14, %s896_s14, %s897_s15  }
  0x21   :  { %890 = dma.done.wait [#allocation3], 1024  }
  0x22   :  { %891 = vsyncadd [#allocation3], 4294966272 }
  0x23   :  { %892 = dma.done.wait [#allocation5], 2048  }
  0x24   :  { %893 = vsyncadd [#allocation5], 4294965248  ;;  %v796_v0 = vld [vmem:[%s1007_s1 + $0x38] sm:$0xff]   ;;  %v797_v1 = vld [vmem:[%s1007_s1 + $0x30] sm:$0xff]  }
  0x25   :  { %711 = vmatprep.subr.bf16.mxu0 %v796_v0  ;;  %v798_v2 = vld [vmem:[%s1007_s1 + $0x28] sm:$0xff]   ;;  %v799_v3 = vld [vmem:[%s1007_s1 + $0x20] sm:$0xff]   ;;  %v806_v5 = vld [vmem:[#allocation2 + $0x38] sm:$0xff]  }
  0x26   :  { %712 = vmatpush3.bf16.msra.mxu0 %v796_v0  ;;  %v804_v4 = vld [vmem:[%s1006_s0] sm:$0xff]   ;;  %v807_v6 = vld [vmem:[#allocation2 + $0x30] sm:$0xff]   ;;  %v800_v7 = vld [vmem:[%s1007_s1 + $0x18] sm:$0xff]   ;;  %731 = vmatprep.subr.bf16.mxu1 %v806_v5 }
  0x27   :  { %713 = vmatprep.subr.bf16.mxu0 %v797_v1  ;;  %727 = vmatprep.mubr.bf16.mxu0 %v804_v4  ;;  %v801_v8 = vld [vmem:[%s1007_s1 + $0x10] sm:$0xff]   ;;  %v808_v9 = vld [vmem:[#allocation2 + $0x28] sm:$0xff]   ;;  %v809_v10 = vld [vmem:[#allocation2 + $0x20] sm:$0xff]  }
  0x28   :  { %732 = vmatpush3.bf16.msra.mxu1 %v806_v5  ;;  %v802_v11 = vld [vmem:[%s1007_s1 + $0x8] sm:$0xff]   ;;  %v810_v12 = vld [vmem:[#allocation2 + $0x18] sm:$0xff]   ;;  %v803_v13 = vld [vmem:[%s1007_s1] sm:$0xff]  }
  0x29   :  { %733 = vmatprep.subr.bf16.mxu1 %v807_v6  ;;  %v805_v14 = vld [vmem:[%s1006_s0 + $0x8] sm:$0xff]   ;;  %v811_v15 = vld [vmem:[#allocation2 + $0x10] sm:$0xff]   ;;  %v813_v17 = vld [vmem:[#allocation2] sm:$0xff]  }
  0x2a   :  { %714 = vmatpush3.bf16.msra.mxu0 %v797_v1  ;;  %v812_v16 = vld [vmem:[#allocation2 + $0x8] sm:$0xff]   ;;  %v814_v18 = vld [vmem:[#allocation4 + $0x38] sm:$0xff]   ;;  %v815_v19 = vld [vmem:[#allocation4 + $0x30] sm:$0xff]  }
  0x2b   :  { %715 = vmatprep.subr.bf16.mxu0 %v798_v2  ;;  %v816_v20 = vld [vmem:[#allocation4 + $0x28] sm:$0xff]   ;;  %v817_v21 = vld [vmem:[#allocation4 + $0x20] sm:$0xff]   ;;  %v818_v22 = vld [vmem:[#allocation4 + $0x18] sm:$0xff]  }
  0x2c   :  { %734 = vmatpush3.bf16.msra.mxu1 %v807_v6  ;;  %v614_v25 = vld [vmem:[%s1008_s2] ss:$0 sm:$0xff]  ;;  %v819_v38 = vld [vmem:[#allocation4 + $0x10] sm:$0xff]   ;;  %v820_v39 = vld [vmem:[#allocation4 + $0x8] sm:$0xff]  }
  0x2d   :  { %735 = vmatprep.subr.bf16.mxu1 %v808_v9  ;;  %v821_v40 = vld [vmem:[#allocation4] sm:$0xff]   ;;  %v822_v41 = vld [vmem:[#allocation6 + $0x38] sm:$0xff]   ;;  %v823_v42 = vld [vmem:[#allocation6 + $0x30] sm:$0xff]  }
  0x2e   :  { %716 = vmatpush3.bf16.msra.mxu0 %v798_v2  ;;  %v824_v43 = vld [vmem:[#allocation6 + $0x28] sm:$0xff]   ;;  %v825_v44 = vld [vmem:[#allocation6 + $0x20] sm:$0xff]   ;;  %v826_v45 = vld [vmem:[#allocation6 + $0x18] sm:$0xff]  }
  0x2f   :  { %717 = vmatprep.subr.bf16.mxu0 %v799_v3  ;;  %v625_v48 = vld [vmem:[%s1010_s4] ss:$0 sm:$0xff]  ;;  %v827_v61 = vld [vmem:[#allocation6 + $0x10] sm:$0xff]   ;;  %v828_v62 = vld [vmem:[#allocation6 + $0x8] sm:$0xff]  }
  0x30   :  { %736 = vmatpush3.bf16.msra.mxu1 %v808_v9  ;;  %v829_v63 = vld [vmem:[#allocation6] sm:$0xff]  }
  0x31   :  { %737 = vmatprep.subr.bf16.mxu1 %v809_v10  ;;  %v634_v2 = vld [vmem:[%s1012_s6] ss:$0 sm:$0xff] }
  0x32   :  { %718 = vmatpush3.bf16.msra.mxu0 %v799_v3 }
  0x33   :  { %719 = vmatprep.subr.bf16.mxu0 %v800_v7 }
  0x34   :  { %738 = vmatpush3.bf16.msra.mxu1 %v809_v10 }
  0x35   :  { %739 = vmatprep.subr.bf16.mxu1 %v810_v12 }
  0x36   :  { %720 = vmatpush3.bf16.msra.mxu0 %v800_v7 }
  0x37   :  { %721 = vmatprep.subr.bf16.mxu0 %v801_v8 }
  0x38   :  { %740 = vmatpush3.bf16.msra.mxu1 %v810_v12 }
  0x39   :  { %741 = vmatprep.subr.bf16.mxu1 %v811_v15 }
  0x3a   :  { %722 = vmatpush3.bf16.msra.mxu0 %v801_v8 }
  0x3b   :  { %723 = vmatprep.subr.bf16.mxu0 %v802_v11 }
  0x3c   :  { %742 = vmatpush3.bf16.msra.mxu1 %v811_v15 }
  0x3d   :  { %743 = vmatprep.subr.bf16.mxu1 %v812_v16 }
  0x3e   :  { %724 = vmatpush3.bf16.msra.mxu0 %v802_v11 }
  0x3f   :  { %725 = vmatprep.subr.bf16.mxu0 %v803_v13 }
  0x40   :  { %744 = vmatpush3.bf16.msra.mxu1 %v812_v16  ;;  %v643_v16 = vld [vmem:[%s1014_s8] ss:$0 sm:$0xff] }
  0x41   :  { %745 = vmatprep.subr.bf16.mxu1 %v813_v17 }
  0x42   :  { %726 = vmatpush3.bf16.msra.mxu0 %v803_v13 }
  0x43   :  { %751 = vmatprep.subr.bf16.mxu0 %v814_v18 }
  0x44   :  { %746 = vmatpush3.bf16.msra.mxu1 %v813_v17 }
  0x45   :  { %728 = vmatmul.mubr.bf16.vlgmr.msra.gmra.mxu0 %v805_v14  ;;  %771 = vmatprep.subr.bf16.mxu1 %v822_v41 }
  0x46   :  { %752 = vmatpush3.bf16.msra.mxu0 %v814_v18 }
  0x47   :  { %753 = vmatprep.subr.bf16.mxu0 %v815_v19 }
  0x4a   :  { %754 = vmatpush3.bf16.msra.mxu0 %v815_v19 }
  0x4b   :  { %755 = vmatprep.subr.bf16.mxu0 %v816_v20 }
  0x4e   :  { %756 = vmatpush3.bf16.msra.mxu0 %v816_v20 }
  0x4f   :  { %757 = vmatprep.subr.bf16.mxu0 %v817_v21 }
  0x52   :  { %758 = vmatpush3.bf16.msra.mxu0 %v817_v21 }
  0x53   :  { %759 = vmatprep.subr.bf16.mxu0 %v818_v22 }
  0x56   :  { %760 = vmatpush3.bf16.msra.mxu0 %v818_v22 }
  0x57   :  { %761 = vmatprep.subr.bf16.mxu0 %v819_v38 }
  0x5a   :  { %762 = vmatpush3.bf16.msra.mxu0 %v819_v38 }
  0x5b   :  { %763 = vmatprep.subr.bf16.mxu0 %v820_v39 }
  0x5e   :  { %764 = vmatpush3.bf16.msra.mxu0 %v820_v39 }
  0x5f   :  { %765 = vmatprep.subr.bf16.mxu0 %v821_v40 }
  0x62   :  { %766 = vmatpush3.bf16.msra.mxu0 %v821_v40 }
 0x105   :  { %v729_v23 = vpop.f32.mrf.mxu0 }
 0x106   :  { %v204_v29 = vadd.f32 %v729_v23, %v614_v25 }
 0x107   :  { %v195_v24 = vpop.f32.mrf.mxu0 }
 0x108   :  { %v196_v27 = vadd.f32 %v614_v25, %v195_v24  ;;  %v212_v35 = vmax.f32 %v204_v29, 0.0 }
 0x109   :  { %v730_v26 = vpop.f32.mrf.mxu0 }
 0x10a   :  { %v207_v28 = vadd.f32 %v730_v26, %v614_v25  ;;  %v210_v33 = vmax.f32 %v196_v27, 0.0 }
 0x10b   :  { %v198_v30 = vpop.f32.mrf.mxu0 }
 0x10c   :  { %v199_v31 = vadd.f32 %v614_v25, %v198_v30  ;;  %v213_v32 = vmax.f32 %v207_v28, 0.0 }
 0x10e   :  { %v211_v34 = vmax.f32 %v199_v31, 0.0  ;;  %v215_v37 = vpack.c.bf16 %v213_v32, %v212_v35 }
 0x110   :  { %v214_v36 = vpack.c.bf16 %v211_v34, %v210_v33 }
 0x112   :  { %747 = vmatprep.mubr.bf16.mxu1 %v214_v36 }
 0x113   :  { %748 = vmatmul.mubr.bf16.vlgmr.msra.gmra.mxu1 %v215_v37 }
 0x114   :  { %772 = vmatpush3.bf16.msra.mxu1 %v822_v41 }
 0x115   :  { %773 = vmatprep.subr.bf16.mxu1 %v823_v42 }
 0x118   :  { %774 = vmatpush3.bf16.msra.mxu1 %v823_v42 }
 0x119   :  { %775 = vmatprep.subr.bf16.mxu1 %v824_v43 }
 0x11c   :  { %776 = vmatpush3.bf16.msra.mxu1 %v824_v43 }
 0x11d   :  { %777 = vmatprep.subr.bf16.mxu1 %v825_v44 }
 0x120   :  { %778 = vmatpush3.bf16.msra.mxu1 %v825_v44 }
 0x121   :  { %779 = vmatprep.subr.bf16.mxu1 %v826_v45 }
 0x124   :  { %780 = vmatpush3.bf16.msra.mxu1 %v826_v45 }
 0x125   :  { %781 = vmatprep.subr.bf16.mxu1 %v827_v61 }
 0x128   :  { %782 = vmatpush3.bf16.msra.mxu1 %v827_v61 }
 0x129   :  { %783 = vmatprep.subr.bf16.mxu1 %v828_v62 }
 0x12c   :  { %784 = vmatpush3.bf16.msra.mxu1 %v828_v62 }
 0x12d   :  { %785 = vmatprep.subr.bf16.mxu1 %v829_v63 }
 0x130   :  { %786 = vmatpush3.bf16.msra.mxu1 %v829_v63 }
 0x1d3   :  { %v749_v46 = vpop.f32.mrf.mxu1 }
 0x1d4   :  { %v330_v52 = vadd.f32 %v749_v46, %v625_v48 }
 0x1d5   :  { %v321_v47 = vpop.f32.mrf.mxu1 }
 0x1d6   :  { %v322_v50 = vadd.f32 %v625_v48, %v321_v47  ;;  %v338_v58 = vmax.f32 %v330_v52, 0.0 }
 0x1d7   :  { %v750_v49 = vpop.f32.mrf.mxu1 }
 0x1d8   :  { %v333_v51 = vadd.f32 %v750_v49, %v625_v48  ;;  %v336_v56 = vmax.f32 %v322_v50, 0.0 }
 0x1d9   :  { %v324_v53 = vpop.f32.mrf.mxu1 }
 0x1da   :  { %v325_v54 = vadd.f32 %v625_v48, %v324_v53  ;;  %v339_v55 = vmax.f32 %v333_v51, 0.0 }
 0x1dc   :  { %v337_v57 = vmax.f32 %v325_v54, 0.0  ;;  %v341_v60 = vpack.c.bf16 %v339_v55, %v338_v58 }
 0x1de   :  { %v340_v59 = vpack.c.bf16 %v337_v57, %v336_v56 }
 0x1e0   :  { %767 = vmatprep.mubr.bf16.mxu0 %v340_v59 }
 0x1e1   :  { %768 = vmatmul.mubr.bf16.vlgmr.msra.gmra.mxu0 %v341_v60 }
 0x2a1   :  { %v769_v0 = vpop.f32.mrf.mxu0 }
 0x2a2   :  { %v456_v6 = vadd.f32 %v769_v0, %v634_v2 }
 0x2a3   :  { %v447_v1 = vpop.f32.mrf.mxu0 }
 0x2a4   :  { %v448_v4 = vadd.f32 %v634_v2, %v447_v1  ;;  %v464_v12 = vmax.f32 %v456_v6, 0.0 }
 0x2a5   :  { %v770_v3 = vpop.f32.mrf.mxu0 }
 0x2a6   :  { %v459_v5 = vadd.f32 %v770_v3, %v634_v2  ;;  %v462_v10 = vmax.f32 %v448_v4, 0.0 }
 0x2a7   :  { %v450_v7 = vpop.f32.mrf.mxu0 }
 0x2a8   :  { %v451_v8 = vadd.f32 %v634_v2, %v450_v7  ;;  %v465_v9 = vmax.f32 %v459_v5, 0.0 }
 0x2aa   :  { %v463_v11 = vmax.f32 %v451_v8, 0.0  ;;  %v467_v14 = vpack.c.bf16 %v465_v9, %v464_v12 }
 0x2ac   :  { %v466_v13 = vpack.c.bf16 %v463_v11, %v462_v10 }
 0x2ae   :  { %787 = vmatprep.mubr.bf16.mxu1 %v466_v13 }
 0x2af   :  { %788 = vmatmul.mubr.bf16.vlgmr.msra.gmra.mxu1 %v467_v14 }
 0x36f   :  { %v789_v15 = vpop.f32.mrf.mxu1 }
 0x370   :  { %v582_v19 = vadd.f32 %v789_v15, %v643_v16 }
 0x371   :  { %v573_v17 = vpop.f32.mrf.mxu1 }
 0x372   :  { %v574_v22 = vadd.f32 %v643_v16, %v573_v17 }
 0x373   :  { %v790_v18 = vpop.f32.mrf.mxu1 }
 0x374   :  { %v585_v20 = vadd.f32 %v790_v18, %v643_v16 }
 0x375   :  { %v576_v21 = vpop.f32.mrf.mxu1 }
 0x376   :  { %v668_v23 = vpack.c.bf16 %v585_v20, %v582_v19  ;;  %v577_v24 = vadd.f32 %v643_v16, %v576_v21 }
 0x378   :  { %670 = vst [vmem:[%s1015_s9 + $0x8] sm:$0xff] %v668_v23   ;;  %v663_v25 = vpack.c.bf16 %v577_v24, %v574_v22 }
 0x37a   :  { %664 = vst [vmem:[%s1015_s9] sm:$0xff] %v663_v25  }
 0x37b   :  { %612 = vsyncpa [#allocation3], 1 }
 0x37c   :  { %613 = vsyncpa [#allocation5], 1 }

</bundles_post_ra>
